<compile_context>
chip_gen: v6e
topology: v6e:2x2x1
jax: 0.10.0
libtpu: 0.0.40
codegen_flags: <defaults>
</compile_context>

<pallas_src>
import jax
import jax.numpy as jnp
from jax.experimental import pallas as pl
from jax.experimental.pallas import tpu as pltpu

P_DROP = 0.3
KEEP_SCALE = 1.0 / (1.0 - P_DROP)
LANES = 128
SUBLANES = 8


def _dropout_mul_randn_sum_kernel(x_ref, u_ref, n_ref, o_ref):
    """One (block_rows, 128) tile: dropout mask * noise multiply + partial-sum accumulate."""
    i = pl.program_id(0)

    @pl.when(i == 0)
    def _init():
        o_ref[0, 0] = jnp.float32(0.0)

    # dropout keep-mask: keep iff uniform >= p   (P(keep) = 1 - p)
    keep = u_ref[...] >= jnp.float32(P_DROP)
    # 1/(1-p) scale is folded out of the vector path (applied once in the epilogue)
    prod = jnp.where(keep, x_ref[...] * n_ref[...], jnp.float32(0.0))
    o_ref[0, 0] += jnp.sum(prod)

    @pl.when(i == pl.num_programs(0) - 1)
    def _finalize():
        o_ref[0, 0] = o_ref[0, 0] * jnp.float32(KEEP_SCALE)


def model_forward(x1, key, *, block_rows=256):
    """Pallas equivalent of (dropout(x1, 0.3) * randn_like(x1)).sum() -> f32 scalar."""
    x_flat = jnp.ravel(x1).astype(jnp.float32)
    n = x_flat.shape[0]

    # Lane-dense padded layout: (rows_padded, 128), rows_padded a multiple of the
    # block height (and >= 8 sublanes). Zero padding contributes 0 to the sum.
    rows = max(pl.cdiv(n, LANES), 1)
    block_rows = max(SUBLANES, min(block_rows, pl.cdiv(rows, SUBLANES) * SUBLANES))
    rows_padded = pl.cdiv(rows, block_rows) * block_rows
    padded_n = rows_padded * LANES

    x2 = jnp.zeros((padded_n,), jnp.float32).at[:n].set(x_flat)
    x2 = x2.reshape(rows_padded, LANES)

    # Randomness from the portable JAX PRNG (works on TPU and in interpret mode).
    # TODO(synk): on real TPU hardware the in-kernel pltpu.prng_seed/stateful_normal
    # path would avoid the extra HBM traffic, but it has no CPU/interpret lowering.
    ku, kn = jax.random.split(key)
    u = jax.random.uniform(ku, (rows_padded, LANES), dtype=jnp.float32)
    v2 = jax.random.normal(kn, (rows_padded, LANES), dtype=jnp.float32)

    grid = (rows_padded // block_rows,)
    tile_spec = pl.BlockSpec((block_rows, LANES), lambda i: (i, 0))

    out = pl.pallas_call(
        _dropout_mul_randn_sum_kernel,
        out_shape=jax.ShapeDtypeStruct((1, 1), jnp.float32),
        grid_spec=pltpu.PrefetchScalarGridSpec(
            num_scalar_prefetch=0,
            grid=grid,
            in_specs=[tile_spec, tile_spec, tile_spec],
            out_specs=pl.BlockSpec(
                (1, 1), lambda i: (0, 0),
                memory_space=pltpu.MemorySpace.SMEM),
        ),
        compiler_params=pltpu.CompilerParams(
            dimension_semantics=("arbitrary",)),
    )(x2, u, v2)
    return out[0, 0]


if __name__ == "__main__":
    key = jax.random.PRNGKey(0)
    kx, kr = jax.random.split(key)
    # Same shape as the PyTorch reference: x1 = torch.randn(1, 2, 2)
    x1 = jax.random.normal(kx, (1, 2, 2), dtype=jnp.float32)

    result = model_forward(x1, kr)
    jax.block_until_ready(result)

    assert result.shape == () and result.dtype == jnp.float32
    assert bool(jnp.isfinite(result))
    print("KERNEL_OK")
</pallas_src>

<mosaic_0001>
module attributes {stable_mosaic.version = 11 : i64} {
  func.func @_dropout_mul_randn_sum_kernel(%arg0: i32, %arg1: memref<8x128xf32, #tpu.memory_space<vmem>>, %arg2: memref<8x128xf32, #tpu.memory_space<vmem>>, %arg3: memref<8x128xf32, #tpu.memory_space<vmem>>, %arg4: memref<1x1xf32, #tpu.memory_space<smem>>) attributes {dimension_semantics = [#tpu.dimension_semantics<arbitrary>], iteration_bounds = array<i64: 1>, scalar_prefetch = 0 : i64, scratch_operands = 0 : i64, tpu.core_type = #tpu.core_type<tc>, window_params = [{transform_indices = @transform_0, window_bounds = array<i64: 8, 128>}, {transform_indices = @transform_1, window_bounds = array<i64: 8, 128>}, {transform_indices = @transform_2, window_bounds = array<i64: 8, 128>}, {transform_indices = @transform_3, window_bounds = array<i64: 1, 1>}]} {
    %c0_i32 = arith.constant 0 : i32
    %0 = arith.cmpi eq, %arg0, %c0_i32 : i32
    %1 = arith.extui %0 : i1 to i32
    %c0_i32_0 = arith.constant 0 : i32
    %2 = arith.cmpi ne, %1, %c0_i32_0 : i32
    scf.if %2 {
      %cst_14 = arith.constant 0.000000e+00 : f32
      %c0_15 = arith.constant 0 : index
      %c0_16 = arith.constant 0 : index
      %21 = memref.load %arg4[%c0_15, %c0_16] : memref<1x1xf32, #tpu.memory_space<smem>>
      memref.store %cst_14, %arg4[%c0_15, %c0_16] : memref<1x1xf32, #tpu.memory_space<smem>>
    } else {
    }
    %c0 = arith.constant 0 : index
    %c0_1 = arith.constant 0 : index
    %3 = vector.load %arg2[%c0, %c0_1] : memref<8x128xf32, #tpu.memory_space<vmem>>, vector<8x128xf32>
    %cst = arith.constant 3.000000e-01 : f32
    %4 = vector.broadcast %cst : f32 to vector<8x128xf32>
    %5 = arith.cmpf oge, %3, %4 : vector<8x128xf32>
    %c0_2 = arith.constant 0 : index
    %c0_3 = arith.constant 0 : index
    %6 = vector.load %arg1[%c0_2, %c0_3] : memref<8x128xf32, #tpu.memory_space<vmem>>, vector<8x128xf32>
    %c0_4 = arith.constant 0 : index
    %c0_5 = arith.constant 0 : index
    %7 = vector.load %arg3[%c0_4, %c0_5] : memref<8x128xf32, #tpu.memory_space<vmem>>, vector<8x128xf32>
    %8 = arith.mulf %6, %7 : vector<8x128xf32>
    %cst_6 = arith.constant 0.000000e+00 : f32
    %9 = vector.broadcast %cst_6 : f32 to vector<8x128xf32>
    %10 = arith.select %5, %8, %9 : vector<8x128xi1>, vector<8x128xf32>
    %c0_7 = arith.constant 0 : index
    %c0_8 = arith.constant 0 : index
    %11 = memref.load %arg4[%c0_7, %c0_8] : memref<1x1xf32, #tpu.memory_space<smem>>
    %12 = vector.shape_cast %10 : vector<8x128xf32> to vector<1x8x128xf32>
    %cst_9 = arith.constant dense<0.000000e+00> : vector<1xf32>
    %13 = vector.multi_reduction <add>, %12, %cst_9 [1, 2] : vector<1x8x128xf32> to vector<1xf32>
    %14 = vector.shape_cast %13 : vector<1xf32> to vector<1x1x1xf32>
    %15 = vector.extract %14[0, 0, 0] : f32 from vector<1x1x1xf32>
    %16 = arith.addf %11, %15 : f32
    %c0_10 = arith.constant 0 : index
    %c0_11 = arith.constant 0 : index
    %17 = memref.load %arg4[%c0_10, %c0_11] : memref<1x1xf32, #tpu.memory_space<smem>>
    memref.store %16, %arg4[%c0_10, %c0_11] : memref<1x1xf32, #tpu.memory_space<smem>>
    %c0_i32_12 = arith.constant 0 : i32
    %18 = arith.cmpi eq, %arg0, %c0_i32_12 : i32
    %19 = arith.extui %18 : i1 to i32
    %c0_i32_13 = arith.constant 0 : i32
    %20 = arith.cmpi ne, %19, %c0_i32_13 : i32
    scf.if %20 {
      %c0_14 = arith.constant 0 : index
      %c0_15 = arith.constant 0 : index
      %21 = memref.load %arg4[%c0_14, %c0_15] : memref<1x1xf32, #tpu.memory_space<smem>>
      %cst_16 = arith.constant 1.42857146 : f32
      %22 = arith.mulf %21, %cst_16 : f32
      %c0_17 = arith.constant 0 : index
      %c0_18 = arith.constant 0 : index
      %23 = memref.load %arg4[%c0_17, %c0_18] : memref<1x1xf32, #tpu.memory_space<smem>>
      memref.store %22, %arg4[%c0_17, %c0_18] : memref<1x1xf32, #tpu.memory_space<smem>>
    } else {
    }
    return
  }
  func.func @transform_0(%arg0: i32) -> (i32, i32) {
    %c0_i32 = arith.constant 0 : i32
    %c0_i32_0 = arith.constant 0 : i32
    return %arg0, %c0_i32 : i32, i32
  }
  func.func @transform_1(%arg0: i32) -> (i32, i32) {
    %c0_i32 = arith.constant 0 : i32
    %c0_i32_0 = arith.constant 0 : i32
    return %arg0, %c0_i32 : i32, i32
  }
  func.func @transform_2(%arg0: i32) -> (i32, i32) {
    %c0_i32 = arith.constant 0 : i32
    %c0_i32_0 = arith.constant 0 : i32
    return %arg0, %c0_i32 : i32, i32
  }
  func.func @transform_3(%arg0: i32) -> (i32, i32) {
    %c0_i32 = arith.constant 0 : i32
    %c0_i32_0 = arith.constant 0 : i32
    %c0_i32_1 = arith.constant 0 : i32
    return %c0_i32, %c0_i32_0 : i32, i32
  }
}

</mosaic_0001>

<bundles_post_ra>
// kernel: tpu_custom_call.1
= control target key start
LH: loop header
LB: loop body
LE: loop exit
PB: predicated region body
PF: predicated region fallthrough
CT: control target
= control target key end

     0   :  { %8 = vsyncpa [#allocation3], 0  ;;  %s213_s0 = inlined_call_operand.hbm [shape: f32[8,128], index: 0, kind: input, shape index: {}]   ;;  %s214_s1 = inlined_call_operand.hbm [shape: f32[8,128], index: 1, kind: input, shape index: {}]   ;;  %s215_s2 = inlined_call_operand.hbm [shape: f32[8,128], index: 2, kind: input, shape index: {}]   ;;  %s216_s3 = inlined_call_operand.hbm [shape: f32[1,1], index: 3, kind: output, shape index: {}]  }
   0x1   :  { %9 = vsyncpa [#allocation6], 0 }
   0x2   :  { %10 = vsyncpa [#allocation4], 0  ;;  %s177_s12 = smov [#allocation5]   ;;  %s178_s14 = smov [#allocation2]  }
   0x3   :  { %s27_s13 = sshll.u32 %s177_s12, 4  ;;  %s17_s15 = sshll.u32 %s178_s14, 4  ;;  %s28_s13 = int_to_ptr.vmem [resolvable:$true] %s27_s13  ;;  %s18_s15 = int_to_ptr.vmem [resolvable:$true] %s17_s15 }
   0x4   :  { %s111_s16 = scalar_lea.vmem %s28_s13, 128  ;;  %p116_p1 = scmp.lt.s32.totalorder %s28_s13, %s28_s13 }
   0x5   :  { %p112_p0 = scmp.ne.s32.totalorder %s28_s13, %s111_s16  ;;  %p117_p2 = scmp.lt.s32.totalorder %s111_s16, %s111_s16 }
   0x7   :  { %p118_p3 = por %p117_p2, %p116_p1 }
   0x9   :  { %p119_p4 = pnand %p118_p3, %p112_p0 }
   0xb   :  { %122 = shalt.err (!%p119_p4)
}
   0xc   :  { %30 = dma.hbm_to_vmem [thread:$0]  %s214_s1, 128, %s28_s13, [#allocation6]  }
   0xd   :  { %s131_s19 = scalar_lea.vmem %s18_s15, 128  ;;  %p136_p6 = scmp.lt.s32.totalorder %s18_s15, %s18_s15 }
   0xe   :  { %p132_p5 = scmp.ne.s32.totalorder %s18_s15, %s131_s19  ;;  %p137_p7 = scmp.lt.s32.totalorder %s131_s19, %s131_s19 }
  0x10   :  { %p138_p8 = por %p137_p7, %p136_p6 }
  0x12   :  { %p139_p9 = pnand %p138_p8, %p132_p5 }
  0x14   :  { %142 = shalt.err (!%p139_p9)
}
  0x15   :  { %20 = dma.hbm_to_vmem [thread:$0]  %s213_s0, 128, %s18_s15, [#allocation3]  }
  0x16   :  { %s179_s22 = smov [#allocation7]  }
  0x17   :  { %s37_s23 = sshll.u32 %s179_s22, 4  ;;  %s38_s23 = int_to_ptr.vmem [resolvable:$true] %s37_s23 }
  0x18   :  { %s151_s24 = scalar_lea.vmem %s38_s23, 128  ;;  %p156_p11 = scmp.lt.s32.totalorder %s38_s23, %s38_s23 }
  0x19   :  { %p152_p10 = scmp.ne.s32.totalorder %s38_s23, %s151_s24  ;;  %p157_p12 = scmp.lt.s32.totalorder %s151_s24, %s151_s24 }
  0x1b   :  { %p158_p13 = por %p157_p12, %p156_p11 }
  0x1d   :  { %p159_p0 = pnand %p158_p13, %p152_p10 }
  0x1f   :  { %162 = shalt.err (!%p159_p0)
}
  0x20   :  { %40 = dma.hbm_to_vmem [thread:$0]  %s215_s2, 128, %s38_s23, [#allocation6]  }
  0x21   :  { %171 = dma.done.wait [#allocation3], 128  }
  0x22   :  { %172 = vsyncadd [#allocation3], 4294967168 }
  0x23   :  { %173 = dma.done.wait [#allocation6], 256  }
  0x24   :  { %174 = vsyncadd [#allocation6], 4294967040  ;;  %v56_v0 = vld [vmem:[#allocation5] sm:$0xff]  ;;  %v58_v1 = vld [vmem:[#allocation2] sm:$0xff]  ;;  %s180_s26 = smov [#allocation8]  }
  0x25   :  { %v59_v2 = vld [vmem:[#allocation7] sm:$0xff]  ;;  %vm57_vm0 = vcmp.ge.f32.partialorder %v56_v0, 0.3 }
  0x26   :  { %v60_v3 = vmul.f32 %v59_v2, %v58_v1 }
  0x28   :  { %v61_v4 = vsel %vm57_vm0, %v60_v3, 0.0 }
  0x29   :  { %63 = vadd.xlane.f32.xlu0 %v61_v4 }
  0xb2   :  { %v64_v5 = vpop.xlane.xlu0 %63 }
  0xb3   :  { %v65_v6 = vrot.slane %v64_v5, 4 }
  0xb5   :  { %v66_v7 = vadd.f32 %v65_v6, %v64_v5 }
  0xb7   :  { %v67_v8 = vrot.slane %v66_v7, 2 }
  0xb9   :  { %v68_v9 = vadd.f32 %v67_v8, %v66_v7 }
  0xbb   :  { %v69_v10 = vrot.slane %v68_v9, 1 }
  0xbd   :  { %v70_v11 = vadd.f32 %v69_v10, %v68_v9 }
  0xbf   :  { %96 = vpush %v70_v11 }
  0xf0   :  { %s97_s0 = spop %96 }
  0xf1   :  { %s79_s2 = smul.f32 1.4285715, %s97_s0 }
  0xf3   :  { %80 = sst [smem:[#allocation8]] %s79_s2 }
  0xf4   :  { %88 = dma.smem_to_hbm %s180_s26, 16, %s216_s3, [#allocation4]  }
  0xf5   :  { %175 = dma.done.wait [#allocation4], 16  }
  0xf6   :  { %176 = vsyncadd [#allocation4], 4294967280 }
  0xf7   :  { %92 = sfence }
  0xf8   :  { %93 = vsyncpa [#allocation3], 1 }
  0xf9   :  { %94 = vsyncpa [#allocation6], 1 }
  0xfa   :  { %95 = vsyncpa [#allocation4], 1 }

</bundles_post_ra>
